<compile_context>
chip_gen: v5e
topology: v5e:2x2
jax: 0.10.0
libtpu: 0.0.40
codegen_flags: <defaults>
</compile_context>

<pallas_src>
import numpy as np
import jax
import jax.numpy as jnp
from jax.experimental import pallas as pl
from jax.experimental.pallas import tpu as pltpu


def _make_invconv_kernel(nb):
    """Kernel for one (nb, C, tile_hw) block: out[b] = W @ x[b] per batch row."""

    def kernel(w_ref, x_ref, o_ref):
        w = w_ref[...]
        # Static unroll over the (small) batch sub-block: each iteration is a
        # clean lane-dense (C, C) @ (C, tile_hw) MXU matmul, no transposes.
        for b in range(nb):
            o_ref[b] = jnp.dot(
                w,
                x_ref[b],
                preferred_element_type=jnp.float32,
                precision=jax.lax.Precision.HIGHEST,
            ).astype(o_ref.dtype)

    return kernel


def _choose_tiling(n, c, hw, target_step_bytes=4 << 20, max_nb=16):
    """Pick (nb, tile_hw) so one grid step moves ~target_step_bytes (x + out)."""
    # f32 elements of x (== elements of out) moved per grid step at the target.
    target_elems = max(128, target_step_bytes // (2 * 4))

    if c * hw <= target_elems:
        # Whole spatial extent in one lane-dense block (block dim == full HW is
        # legal even when HW is not a multiple of 128); pack several batch
        # elements per block to amortize per-step pipeline overhead.
        tile_hw = hw
        nb = int(max(1, min(n, max_nb, target_elems // max(1, c * hw))))
    else:
        nb = 1
        tile_hw = (min(hw, target_elems // c) // 128) * 128
        tile_hw = max(128, tile_hw)
        if tile_hw > hw:          # only possible when hw < 128
            tile_hw = hw          # == full dim -> still a legal block shape

    # v7x has two TensorCores: make sure both get work when the shape allows.
    if pl.cdiv(n, nb) * pl.cdiv(hw, tile_hw) < 2:
        if n > 1 and nb > 1:
            nb = (n + 1) // 2
        elif tile_hw == hw and hw >= 256:
            tile_hw = (((hw + 1) // 2) + 127) // 128 * 128

    return nb, tile_hw


def inv_conv2d_forward(x_nchw, weight_c_c, *, target_step_bytes=4 << 20):
    """Forward of InvConv2d.

    Args:
      x_nchw:     (N, C, H, W) float32 input (PyTorch NCHW convention).
      weight_c_c: (C, C) float32 weight (the squeezed (C, C, 1, 1) conv kernel).
    Returns:
      (out, logdet): out is (N, C, H, W), logdet is a scalar.
    """
    N, C, H, W = x_nchw.shape
    HW = H * W

    nb, tile_hw = _choose_tiling(N, C, HW, target_step_bytes=target_step_bytes)
    grid = (pl.cdiv(N, nb), pl.cdiv(HW, tile_hw))

    # NCHW-native flatten of the spatial dims; no padding, no post-slice.
    # Ragged last blocks (batch and/or spatial) are masked by Pallas: OOB
    # input columns read garbage that only feeds OOB output columns, whose
    # writes are dropped.
    x3 = x_nchw.reshape(N, C, HW)

    # VMEM working set: double-buffered x-tile + out-tile plus the resident
    # (C, C) weight.  With the ~4 MiB/step traffic target this stays <= ~17 MiB
    # — comfortably inside v7x's 64 MiB VMEM and v5e/v6e's 128 MiB.
    step_bytes = 2 * nb * C * tile_hw * 4          # x tile + out tile, f32
    vmem_need = 2 * step_bytes + 2 * C * C * 4     # double-buffered + weight
    vmem_limit = int(min(40 << 20, max(16 << 20, vmem_need + (4 << 20))))

    cost = pl.CostEstimate(
        flops=2 * N * HW * C * C,
        transcendentals=0,
        bytes_accessed=2 * N * C * HW * 4 + C * C * 4,
    )

    out3 = pl.pallas_call(
        _make_invconv_kernel(nb),
        out_shape=jax.ShapeDtypeStruct((N, C, HW), x_nchw.dtype),
        grid_spec=pltpu.PrefetchScalarGridSpec(
            num_scalar_prefetch=0,
            grid=grid,
            in_specs=[
                # Constant block index across the whole grid -> Pallas keeps
                # the (C, C) weight resident in VMEM instead of re-DMA'ing it.
                pl.BlockSpec((C, C), lambda n, t: (0, 0)),
                pl.BlockSpec((nb, C, tile_hw), lambda n, t: (n, 0, t)),
            ],
            out_specs=pl.BlockSpec((nb, C, tile_hw), lambda n, t: (n, 0, t)),
        ),
        compiler_params=pltpu.CompilerParams(
            dimension_semantics=("parallel", "parallel"),
            vmem_limit_bytes=vmem_limit,
        ),
        cost_estimate=cost,
    )(weight_c_c, x3)

    out = out3.reshape(N, C, H, W)

    # logdet = H * W * slogdet(W)[1]  (scalar, CxC) -- plain JAX.
    # TODO(synk): PyTorch uses float64 for slogdet; TPU has no native f64, so
    # f32 is used here (may lose precision for nearly-singular weights).
    _, logabsdet = jnp.linalg.slogdet(weight_c_c)
    logdet = (H * W) * logabsdet.astype(jnp.float32)

    return out, logdet


def make_invconv_weight(key, in_channel):
    # Mirrors torch: weight = randn(C, C); q, _ = torch.qr(weight); weight = q
    w = jax.random.normal(key, (in_channel, in_channel), dtype=jnp.float32)
    q, _ = jnp.linalg.qr(w)
    return q  # (C, C); conceptually stored as (C, C, 1, 1)


def _check_case(x, weight, target_step_bytes=4 << 20):
    N, C, H, W = x.shape
    out, logdet = inv_conv2d_forward(x, weight, target_step_bytes=target_step_bytes)
    out = jax.block_until_ready(out)
    logdet = jax.block_until_ready(logdet)

    ref_out = jnp.einsum("oc,nchw->nohw", weight, x,
                         precision=jax.lax.Precision.HIGHEST)
    ref_logdet = (H * W) * jnp.linalg.slogdet(weight)[1]
    np.testing.assert_allclose(np.asarray(out), np.asarray(ref_out),
                               rtol=1e-5, atol=1e-5)
    np.testing.assert_allclose(float(logdet), float(ref_logdet),
                               rtol=1e-5, atol=1e-5)
    assert not (np.isnan(float(logdet)) or np.isinf(float(logdet)))


if __name__ == "__main__":
    key = jax.random.PRNGKey(0)
    k_w, k_x1, k_x2, k_x3 = jax.random.split(key, 4)

    C = 8
    weight = make_invconv_weight(k_w, C)                       # (C, C)

    # Main case: moderate spatial extent, spatial tiling path.
    x = jax.random.normal(k_x1, (2, C, 16, 16), dtype=jnp.float32)
    _check_case(x, weight)

    # Small-H*W Glow level: batch-blocking path (nb > 1, unrolled dots).
    x_small = jax.random.normal(k_x2, (4, C, 8, 8), dtype=jnp.float32)
    _check_case(x_small, weight)

    # Non-128-divisible H*W with forced spatial tiling: ragged last block,
    # no host-side pad/slice.
    x_ragged = jax.random.normal(k_x3, (1, C, 15, 20), dtype=jnp.float32)
    _check_case(x_ragged, weight, target_step_bytes=8 << 10)

    print("KERNEL_OK")
</pallas_src>

<mosaic_0001>
module attributes {stable_mosaic.version = 11 : i64} {
  func.func @kernel(%arg0: i32, %arg1: i32, %arg2: memref<8x8xf32, #tpu.memory_space<vmem>>, %arg3: memref<1x8x256xf32, #tpu.memory_space<vmem>>, %arg4: memref<1x8x256xf32, #tpu.memory_space<vmem>>) attributes {dimension_semantics = [#tpu.dimension_semantics<parallel>, #tpu.dimension_semantics<parallel>], iteration_bounds = array<i64: 2, 1>, scalar_prefetch = 0 : i64, scratch_operands = 0 : i64, tpu.core_type = #tpu.core_type<tc>, window_params = [{pipeline_mode = #tpu.pipeline_mode<synchronous>, transform_indices = @transform_0, window_bounds = array<i64: 8, 8>}, {transform_indices = @transform_1, window_bounds = array<i64: 1, 8, 256>}, {transform_indices = @transform_2, window_bounds = array<i64: 1, 8, 256>}]} {
    %c0 = arith.constant 0 : index
    %c0_0 = arith.constant 0 : index
    %0 = vector.load %arg2[%c0, %c0_0] : memref<8x8xf32, #tpu.memory_space<vmem>>, vector<8x8xf32>
    %c0_1 = arith.constant 0 : index
    %c0_2 = arith.constant 0 : index
    %c0_3 = arith.constant 0 : index
    %1 = vector.load %arg3[%c0_1, %c0_2, %c0_3] : memref<1x8x256xf32, #tpu.memory_space<vmem>>, vector<1x8x256xf32>
    %2 = vector.shape_cast %1 : vector<1x8x256xf32> to vector<8x256xf32>
    %cst = arith.constant dense<0.000000e+00> : vector<8x256xf32>
    %3 = tpu.matmul %0, %2, %cst {dimension_numbers = #tpu.dot_dimension_numbers<[1], [0], [0], [1], [0, 0, 1, 1], [], []>, precision = #tpu.contract_precision<fp32>} : vector<8x8xf32>, vector<8x256xf32>, vector<8x256xf32> -> vector<8x256xf32>
    %c0_4 = arith.constant 0 : index
    %c0_5 = arith.constant 0 : index
    %c0_6 = arith.constant 0 : index
    %4 = vector.load %arg4[%c0_4, %c0_5, %c0_6] : memref<1x8x256xf32, #tpu.memory_space<vmem>>, vector<1x8x256xf32>
    %5 = vector.shape_cast %4 : vector<1x8x256xf32> to vector<8x256xf32>
    %6 = vector.shape_cast %3 : vector<8x256xf32> to vector<1x8x256xf32>
    tpu.vector_store %arg4[%c0_4, %c0_5, %c0_6], %6 {strides = array<i32>} : memref<1x8x256xf32, #tpu.memory_space<vmem>>, vector<1x8x256xf32>,
    return
  }
  func.func @transform_0(%arg0: i32, %arg1: i32) -> (i32, i32) {
    %c0_i32 = arith.constant 0 : i32
    %c0_i32_0 = arith.constant 0 : i32
    %c0_i32_1 = arith.constant 0 : i32
    return %c0_i32, %c0_i32_0 : i32, i32
  }
  func.func @transform_1(%arg0: i32, %arg1: i32) -> (i32, i32, i32) {
    %c0_i32 = arith.constant 0 : i32
    %c0_i32_0 = arith.constant 0 : i32
    return %arg0, %c0_i32, %arg1 : i32, i32, i32
  }
  func.func @transform_2(%arg0: i32, %arg1: i32) -> (i32, i32, i32) {
    %c0_i32 = arith.constant 0 : i32
    %c0_i32_0 = arith.constant 0 : i32
    return %arg0, %c0_i32, %arg1 : i32, i32, i32
  }
}

</mosaic_0001>

<bundles_post_ra>
// kernel: tpu_custom_call.1
= control target key start
LH: loop header
LB: loop body
LE: loop exit
PB: predicated region body
PF: predicated region fallthrough
CT: control target
= control target key end

     0   :  { %7 = vsyncpa [#allocation3], 0  ;;  %s1022_s0 = inlined_call_operand.hbm [shape: f32[8,8], index: 0, kind: input, shape index: {}]   ;;  %s1023_s1 = inlined_call_operand.hbm [shape: f32[2,8,256], index: 1, kind: input, shape index: {}]   ;;  %s1024_s2 = inlined_call_operand.hbm [shape: f32[2,8,256], index: 2, kind: output, shape index: {}]  }
   0x1   :  { %8 = vsyncpa [#allocation6], 0 }
   0x2   :  { %10 = vsyncpa [#allocation6 + $0x1], 0 }
   0x3   :  { %11 = vsyncpa [#allocation4], 0 }
   0x4   :  { %13 = vsyncpa [#allocation4 + $0x1], 0  ;;  %s869_s9 = smov 0   ;;  %s871_s10 = smov 0  }
   0x5   :  { %s873_s11 = smov 0   ;;  %s875_s12 = smov 0  }
   0x6   :  { %s877_s13 = smov 0   ;;  %s879_s14 = smov 0  }
   0x7 LB: > { %s613_s15 = sadd.s32 4294967295, %s851_s14   ;;  %s614_s16 = sadd.s32 4294967294, %s851_s14   ;;  %s851_s14 = sphi %s879_s14, %s19_s14   ;;  %s847_s13 = sphi %s877_s13, %s1036_s13   ;;  %s843_s12 = sphi %s875_s12, %s1035_s12   ;;  %s839_s11 = sphi %s873_s11, %s1034_s11   ;;  %s835_s10 = sphi %s871_s10, %s1033_s10   ;;  %s831_s9 = sphi %s869_s9, %s1032_s9  }
   0x8   : > { %p74_p0 = scmp.ne.s32.totalorder %s835_s10, %s831_s9  ;;  %p903_p1 = scmp.eq.s32.totalorder %s613_s15, 0 }
   0x9   : > { %p907_p2 = scmp.eq.s32.totalorder %s613_s15, 1  ;;  %p106_p3 = scmp.eq.s32.totalorder %s614_s16, 1 }
   0xa   : > { %p913_p4 = por %p903_p1, %p74_p0  ;;  %p615_p5 = scmp.ge.s32.totalorder %s851_s14, 1 }
   0xb   : > { %p918_p6 = por %p106_p3, %p74_p0  ;;  %p113_p7 = scmp.lt.s32.totalorder %s851_s14, 3 }
   0xc   : > { %s125_s23 = sshll.u32 %s1022_s0, 4  ;;  %p617_p9 = scmp.ge.s32.totalorder %s851_s14, 2  ;;  %s126_s23 = int_to_ptr.hbm [resolvable:$true] %s125_s23 }
   0xd   : > { %p926_p8 = pnand %p615_p5, %p113_p7  ;;  %s853_s25 = smov [#allocation2]  }
   0xe   : > { %s127_s26 = sshll.u32 %s853_s25, 4  ;;  %s31_s27 = sadd.s32 1, %s847_s13  ;;  %s128_s26 = int_to_ptr.vmem [resolvable:$true] %s127_s26 }
   0xf   : > { %p640_p10 = pneg %p926_p8  ;;  %p33_p12 = scmp.ge.s32.totalorder %s31_s27, 2 }
  0x10   : > { %s61_s28 = sadd.s32 1, %s839_s11  ;;  %p68_p13 = scmp.ne.s32.totalorder %s839_s11, %s835_s10 }
  0x11   : > { %p641_p11 = pnand %p640_p10, %p903_p1  ;;  %p69_p0 = scmp.eq.s32.totalorder %s851_s14, 0 }
  0x12   : > { %s1038_s27 = smov (%p33_p12, %s31_s27), 0  ;;  %p948_p5 = por %p907_p2, %p68_p13 }
  0x13   : > { %643 = dma.hbm_to_vmem [thread:$0]  (!%p641_p11), %s126_s23, 128, %s128_s26, [#allocation3]  }
  0x14   : > { %p942_p3 = por %p69_p0, %p68_p13  ;;  %s56_s3 = ssub.s32 %s847_s13, %s1038_s27 }
  0x15   : > { %p653_p7 = scmp.lt.s32.totalorder %s851_s14, 2  ;;  %p59_p10 = scmp.eq.s32.totalorder %s56_s3, 0 }
  0x16   : > { %s138_s4 = sand.u32 1, %s839_s11   ;;  %s630_s7 = sshll.u32 %s847_s13, 4 }
  0x17   : > { %s618_s5 = sshll.u32 %s138_s4, 4  ;;  %s149_s16 = scalar_lea.hbm %s1023_s1, %s630_s7 }
  0x18   : > { %s957_s6 = scalar_select %p59_p10, %s839_s11, %s61_s28  }
  0x19   : > { %s142_s21 = scalar_lea.vmem [#allocation5], %s618_s5  ;;  %s151_s18 = sshll.u32 %s149_s16, 4  ;;  %s152_s18 = int_to_ptr.hbm [resolvable:$true] %s151_s18 }
  0x1a   : > { %s153_s22 = sshll.u32 %s142_s21, 4  ;;  %p645_p2 = pnand %p653_p7, %p942_p3  ;;  %s154_s22 = int_to_ptr.vmem [resolvable:$true] %s153_s22 }
  0x1b   : > { %s139_s23 = scalar_lea.sflag [#allocation6], %s138_s4  ;;  %162 = sbr.rel (%p926_p8) target bundleno = 202 (0xca), region = 28 }
  0x1c   : > { %647 = dma.hbm_to_vmem [thread:$0]  (!%p645_p2), %s152_s18, 256, %s154_s22, %s139_s23  }
  0x20   : > { %818 = dma.done.wait (%p903_p1), [#allocation3], 128  }
  0x21   : > { %820 = vsyncadd (%p903_p1), [#allocation3], 4294967168  ;;  %s972_s25 = sand.u32 1, %s835_s10  }
  0x22   : > { %s623_s26 = sshll.u32 %s972_s25, 4  ;;  %s170_s28 = scalar_lea.sflag [#allocation6], %s972_s25 }
  0x23   : > { %s173_s29 = scalar_lea.vmem [#allocation5], %s623_s26 }
  0x24   : > { %822 = dma.done.wait (%p913_p4), %s170_s28, 256  }
  0x25   : > { %824 = vsyncadd (%p913_p4), %s170_s28, 4294967040  ;;  %vm200_vm0 = vcmask 64512   ;;  %v198_v0 = vld [vmem:[%s173_s29] sm:$0xff]  ;;  %v197_v1 = vld [vmem:[#allocation2] sm:$0xff]  ;;  %s194_s17 = scalar_lea.vmem [#allocation7], %s623_s26  ;;  %s631_s19 = sshll.u32 %s843_s12, 4 }
  0x26   : > { %v199_v2 = vld [vmem:[%s173_s29 + $0x8] sm:$0xff]  ;;  %v219_v3 = vand.u32 4294901760, %v198_v0  ;;  %v202_v4 = vsel %vm200_vm0, %v197_v1, 0  ;;  %s512_s4 = scalar_lea.hbm %s1024_s2, %s631_s19  ;;  %s514_s5 = sshll.u32 %s194_s17, 4  ;;  %s515_s5 = int_to_ptr.vmem [resolvable:$true] %s514_s5 }
  0x27   : > { %v365_v5 = vand.u32 4294901760, %v199_v2  ;;  %v221_v6 = vand.u32 4294901760, %v202_v4  ;;  %s516_s7 = sshll.u32 %s512_s4, 4  ;;  %s499_s12 = scalar_lea.sflag [#allocation4], %s972_s25  ;;  %s517_s7 = int_to_ptr.hbm [resolvable:$true] %s516_s7 }
  0x28   : > { %v246_v7 = vsub.f32 %v198_v0, %v219_v3  ;;  %296 = vmatpush.msra.mxu3 %v219_v3  ;;  %220 = vmatpush.msra.mxu0 %v219_v3  ;;  %s779_s8 = sshra.s32 %s517_s7, 4  ;;  %s785_s22 = scalar_lea.hbm %s1024_s2, 32  ;;  %s780_s8 = int_to_ptr.hbm [resolvable:$true] %s779_s8 }
  0x29   : > { %v392_v8 = vsub.f32 %v199_v2, %v365_v5  ;;  %v222_v9 = vsub.f32 %v202_v4, %v221_v6  ;;  %s781_s15 = scalar_lea.hbm %s780_s8, 16  ;;  %p786_p11 = scmp.lt.s32.totalorder %s780_s8, %s1024_s2 }
  0x2a   : > { %273 = vmatpush.msra.mxu2 %v246_v7  ;;  %v247_v10 = vand.u32 4294901760, %v246_v7  ;;  %p782_p1 = scmp.ne.s32.totalorder %s780_s8, %s781_s15  ;;  %p787_p12 = scmp.lt.s32.totalorder %s785_s22, %s781_s15 }
  0x2b   : > { %v393_v11 = vand.u32 4294901760, %v392_v8  ;;  %276 = vmatmul.f32.vlgmr.msra.gmra.mxu2 %v222_v9  ;;  %v223_v12 = vand.u32 4294901760, %v222_v9 }
  0x2c   : > { %366 = vmatpush.msrb.mxu2 %v365_v5  ;;  %v248_v13 = vsub.f32 %v246_v7, %v247_v10  ;;  %322 = vmatpush.msrb.mxu0 %v247_v10  ;;  %p783_p4 = pnand %p782_p1, %p948_p5  ;;  %p788_p13 = por %p787_p12, %p786_p11 }
  0x2d   : > { %v394_v14 = vsub.f32 %v392_v8, %v393_v11  ;;  %300 = vmatmul.f32.vlgmr.msra.gmra.mxu3 %v223_v12  ;;  %v224_v15 = vsub.f32 %v222_v9, %v223_v12 }
  0x2e   : > { %468 = vmatpush.msra.mxu2 %v393_v11  ;;  %v249_v16 = vand.u32 4294901760, %v248_v13  ;;  %p784_p8 = pneg %p783_p4 }
  0x2f   : > { %v395_v17 = vand.u32 4294901760, %v394_v14  ;;  %v225_v18 = vand.u32 4294901760, %v224_v15 }
  0x30   : > { %250 = vmatpush.msra.mxu1 %v249_v16  ;;  %p789_p0 = pnand %p788_p13, %p784_p8 }
  0x31   : > { %396 = vmatpush.msrb.mxu3 %v395_v17  ;;  %226 = vmatmul.f32.vlgmr.msra.gmra.mxu0 %v225_v18 }
  0x32   : > { %252 = vmatmul.f32.vlgmr.msra.gmra.mxu1 %v221_v6  ;;  %419 = vmatpush.msra.mxu0 %v392_v8 }
  0x33   : > { %344 = vmatpush.msrb.mxu1 %v219_v3  ;;  %372 = vmatmul.f32.vlgmr.msrb.gmra.mxu2 %v225_v18 }
  0x34   : > { %490 = vmatpush.msra.mxu3 %v365_v5 }
  0x35   : > { %442 = vmatpush.msra.mxu1 %v365_v5  ;;  %398 = vmatmul.f32.vlgmr.msrb.gmra.mxu3 %v221_v6 }
  0x39   : > { %324 = vmatmul.f32.vlgmr.msrb.gmra.mxu0 %v221_v6 }
  0x3a   : > { %346 = vmatmul.f32.vlgmr.msrb.gmra.mxu1 %v221_v6 }
  0x3b   : > { %470 = vmatmul.f32.vlgmr.msra.gmra.mxu2 %v221_v6 }
  0x3d   : > { %492 = vmatmul.f32.vlgmr.msra.gmra.mxu3 %v221_v6 }
  0x41   : > { %422 = vmatmul.f32.vlgmr.msra.gmra.mxu0 %v222_v9 }
  0x42   : > { %446 = vmatmul.f32.vlgmr.msra.gmra.mxu1 %v223_v12 }
  0xae   : > { %v227_v19 = vpop.f32.mrf.mxu0  ;;  %v277_v22 = vpop.f32.mrf.mxu2 }
  0xaf   : > { %v253_v20 = vpop.f32.mrf.mxu1 }
  0xb0   : > { %v254_v21 = vadd.f32 %v253_v20, %v227_v19  ;;  %v301_v23 = vpop.f32.mrf.mxu3 }
  0xb2   : > { %v278_v24 = vadd.f32 %v277_v22, %v254_v21 }
  0xb4   : > { %v302_v25 = vadd.f32 %v301_v23, %v278_v24 }
  0xb6   : > { %v325_v26 = vpop.f32.mrf.mxu0  ;;  %v373_v29 = vpop.f32.mrf.mxu2 }
  0xb7   : > { %v347_v27 = vpop.f32.mrf.mxu1  ;;  %v326_v28 = vadd.f32 %v325_v26, %v302_v25 }
  0xb8   : > { %v399_v31 = vpop.f32.mrf.mxu3 }
  0xb9   : > { %v348_v30 = vadd.f32 %v347_v27, %v326_v28  ;;  %v400_v32 = vadd.f32 %v399_v31, %v373_v29 }
  0xbb   : > { %496 = vst [vmem:[%s194_s17] sm:$0xff] %v348_v30 }
  0xbe   : > { %v423_v33 = vpop.f32.mrf.mxu0  ;;  %v471_v36 = vpop.f32.mrf.mxu2 }
  0xbf   : > { %v447_v34 = vpop.f32.mrf.mxu1  ;;  %v424_v35 = vadd.f32 %v423_v33, %v400_v32 }
  0xc0   : > { %v493_v38 = vpop.f32.mrf.mxu3 }
  0xc1   : > { %v448_v37 = vadd.f32 %v447_v34, %v424_v35 }
  0xc3   : > { %v472_v39 = vadd.f32 %v471_v36, %v448_v37 }
  0xc5   : > { %v494_v40 = vadd.f32 %v493_v38, %v472_v39 }
  0xc7   : > { %497 = vst [vmem:[%s194_s17 + $0x8] sm:$0xff] %v494_v40 }
  0xc8   : > { %792 = shalt.err (!%p789_p0)
}
  0xc9   : > { %638 = dma.vmem_to_hbm [thread:$0]  (%p948_p5), %s515_s5, 256, %s517_s7, %s499_s12  }
  0xca PF: > { %s528_s25 = sand.u32 1, %s831_s9   ;;  %p649_p3 = pnand %p617_p9, %p918_p6 }
  0xcb   : > { %s529_s26 = scalar_lea.sflag [#allocation4], %s528_s25 }
  0xcc   : > { %p650_p7 = pneg %p649_p3 }
  0xce   : > { %826 = dma.done.wait (%p650_p7), %s529_s26, 256  }
  0xcf   : > { %828 = vsyncadd (%p650_p7), %s529_s26, 4294967040  ;;  %s19_s14 = sadd.s32 1, %s851_s14   ;;  %s1032_s9 = smov %s835_s10 }
  0xd0   : > { %p16_p10 = scmp.ge.s32.totalorder %s19_s14, 4   ;;  %s1033_s10 = smov %s839_s11 }
  0xd1   : > { %s1034_s11 = smov %s957_s6  ;;  %s1035_s12 = smov %s847_s13 }
  0xd2   : > { %s1036_s13 = smov %s1038_s27  ;;  %18 = sbr.rel (!%p16_p10) target bundleno = 7 (0x7), region = 78 }
  0xd7   :  { %535 = vsyncpa [#allocation3], 1 }
  0xd8   :  { %537 = vsyncpa [#allocation3 + $0x1], 1 }
  0xd9   :  { %538 = vsyncpa [#allocation6], 1 }
  0xda   :  { %540 = vsyncpa [#allocation6 + $0x1], 1 }
  0xdb   :  { %541 = vsyncpa [#allocation4], 1 }
  0xdc   :  { %543 = vsyncpa [#allocation4 + $0x1], 1 }

</bundles_post_ra>
